<compile_context>
chip_gen: v6e
topology: v6e:2x2x1
jax: 0.10.0
libtpu: 0.0.40
codegen_flags: <defaults>
</compile_context>

<pallas_src>
import math

import jax
import jax.numpy as jnp
from jax.experimental import pallas as pl
from jax.experimental.pallas import tpu as pltpu

_LANES = 128
_MAX_BLOCK_BYTES = 6 * 1024 * 1024       # per-block cap; safe for v7x (64 MiB VMEM)
_MIN_SPLIT_BYTES_PER_CORE = 512 * 1024   # only shard across TCs if each half >= 0.5 MiB


def _relu_kernel(x_ref, o_ref):
    x = x_ref[...]
    o_ref[...] = jnp.maximum(x, 0)


def _sublane_packing(dtype) -> int:
    return {4: 8, 2: 16, 1: 32}.get(jnp.dtype(dtype).itemsize, 8)


def _num_tensorcores() -> int:
    """Best-effort core-count query; default to 1 (never split) if unknown."""
    try:
        info = pltpu.get_tpu_info()
    except Exception:
        return 1
    for attr in ("num_cores", "core_count", "num_tensorcores", "tensorcore_count"):
        v = getattr(info, attr, None)
        if isinstance(v, int) and v > 0:
            return v
    return 1


def _vmem_capacity_bytes() -> int:
    try:
        cap = pltpu.get_tpu_info().vmem_capacity_bytes
        if isinstance(cap, int) and cap > 0:
            return cap
    except Exception:
        pass
    return 64 * 1024 * 1024  # conservative: v7x per-TC physical VMEM


def _divisors(m: int):
    out = []
    i = 1
    while i * i <= m:
        if m % i == 0:
            out.append(i)
            if i != m // i:
                out.append(m // i)
        i += 1
    out.sort()
    return out


def relu_pallas(x: jax.Array) -> jax.Array:
    """ReLU matching torch.nn.ReLU semantics (elementwise max(x, 0))."""
    orig_shape = x.shape
    dtype = x.dtype
    itemsize = jnp.dtype(dtype).itemsize
    packing = _sublane_packing(dtype)

    n = int(math.prod(orig_shape)) if orig_shape else 1
    nbytes = n * itemsize

    vmem_cap = _vmem_capacity_bytes()
    max_block_bytes = min(_MAX_BLOCK_BYTES, max(vmem_cap // 8, 1 << 20))

    if n % _LANES == 0:
        m = n // _LANES  # number of 128-lane groups
        divs = _divisors(m)
        if nbytes <= max_block_bytes:
            # Small/medium tensor: one full-extent block (grid=(1,)) unless we
            # have >= 2 TensorCores and each half is big enough to be worth it.
            rows = next((d for d in divs if d % packing == 0), m)
            cols = n // rows
            if (_num_tensorcores() >= 2
                    and rows >= 2 * packing
                    and nbytes // 2 >= _MIN_SPLIT_BYTES_PER_CORE):
                half = -(-rows // 2)
                row_tile = -(-half // packing) * packing
            else:
                row_tile = rows
        else:
            # Large tensor: tile.  Lane axis as wide as fits within the block
            # budget at `packing` rows; then grow rows up to the budget.
            max_cols_units = max(max_block_bytes // (_LANES * itemsize * packing), 1)
            cols_units = max((d for d in divs if d <= max_cols_units), default=1)
            cols = cols_units * _LANES
            rows = n // cols
            row_tile = max((max_block_bytes // (cols * itemsize)) // packing * packing,
                           packing)
            row_tile = min(row_tile, rows)
    else:
        # Fallback (element count not a multiple of 128): fold trailing dims so
        # the lane axis is as wide as the shape allows (>= 128 when possible),
        # avoiding narrow masked partial stores.
        cols = 1
        for d in reversed(orig_shape):
            cols *= int(d)
            if cols >= _LANES:
                break
        cols = max(cols, 1)
        rows = max(n // cols, 1)
        if rows * cols * itemsize <= max_block_bytes:
            row_tile = rows
        else:
            row_tile = max((max_block_bytes // (cols * itemsize)) // packing * packing,
                           packing)
            row_tile = min(row_tile, rows)

    x2d = x.reshape(rows, cols)
    grid = (pl.cdiv(rows, row_tile),)
    block_bytes = row_tile * cols * itemsize
    # in+out, double-buffered, plus headroom; clamp to a level safe on all gens.
    vmem_limit = min(max(4 * block_bytes + (2 << 20), 8 << 20), 32 << 20)

    out2d = pl.pallas_call(
        _relu_kernel,
        out_shape=jax.ShapeDtypeStruct((rows, cols), dtype),
        grid=grid,
        in_specs=[pl.BlockSpec((row_tile, cols), lambda i: (i, 0))],
        out_specs=pl.BlockSpec((row_tile, cols), lambda i: (i, 0)),
        input_output_aliases={0: 0},
        cost_estimate=pl.CostEstimate(
            flops=n, transcendentals=0, bytes_accessed=2 * nbytes),
        compiler_params=pltpu.CompilerParams(
            dimension_semantics=("parallel",),
            vmem_limit_bytes=vmem_limit,
        ),
    )(x2d)

    return out2d.reshape(orig_shape)


if __name__ == "__main__":
    key = jax.random.PRNGKey(0)

    # Shape implied by the module's forward: x43 = (1, 128, 28, 28).
    x = jax.random.normal(key, (1, 128, 28, 28), dtype=jnp.float32)
    y_ref = jnp.maximum(x, 0.0)
    y = jax.block_until_ready(relu_pallas(x))
    assert y.shape == x.shape and y.dtype == x.dtype
    assert bool(jnp.allclose(y, y_ref)), "mismatch vs reference ReLU (main shape)"

    # Exercise the non-multiple-of-128 fallback path (folded lane axis).
    x2 = jax.random.normal(jax.random.PRNGKey(1), (2, 3, 5, 7), dtype=jnp.float32)
    y2_ref = jnp.maximum(x2, 0.0)
    y2 = jax.block_until_ready(relu_pallas(x2))
    assert bool(jnp.allclose(y2, y2_ref)), "mismatch vs reference ReLU (fallback shape)"

    print("KERNEL_OK")
</pallas_src>

<mosaic_0001>
module attributes {stable_mosaic.version = 11 : i64} {
  func.func @_relu_kernel(%arg0: i32, %arg1: memref<8x12544xf32, #tpu.memory_space<vmem>>, %arg2: memref<8x12544xf32, #tpu.memory_space<vmem>>) attributes {dimension_semantics = [#tpu.dimension_semantics<parallel>], iteration_bounds = array<i64: 1>, scalar_prefetch = 0 : i64, scratch_operands = 0 : i64, tpu.core_type = #tpu.core_type<tc>, window_params = [{transform_indices = @transform_0, window_bounds = array<i64: 8, 12544>}, {transform_indices = @transform_1, window_bounds = array<i64: 8, 12544>}]} {
    %c0 = arith.constant 0 : index
    %c0_0 = arith.constant 0 : index
    %0 = vector.load %arg1[%c0, %c0_0] : memref<8x12544xf32, #tpu.memory_space<vmem>>, vector<8x12544xf32>
    %cst = arith.constant 0.000000e+00 : f32
    %1 = vector.broadcast %cst : f32 to vector<8x12544xf32>
    %2 = arith.maximumf %0, %1 : vector<8x12544xf32>
    %c0_1 = arith.constant 0 : index
    %c0_2 = arith.constant 0 : index
    %3 = vector.load %arg2[%c0_1, %c0_2] : memref<8x12544xf32, #tpu.memory_space<vmem>>, vector<8x12544xf32>
    tpu.vector_store %arg2[%c0_1, %c0_2], %2 {strides = array<i32>} : memref<8x12544xf32, #tpu.memory_space<vmem>>, vector<8x12544xf32>,
    return
  }
  func.func @transform_0(%arg0: i32) -> (i32, i32) {
    %c0_i32 = arith.constant 0 : i32
    %c0_i32_0 = arith.constant 0 : i32
    return %arg0, %c0_i32 : i32, i32
  }
  func.func @transform_1(%arg0: i32) -> (i32, i32) {
    %c0_i32 = arith.constant 0 : i32
    %c0_i32_0 = arith.constant 0 : i32
    return %arg0, %c0_i32 : i32, i32
  }
}

</mosaic_0001>

<bundles_post_ra>
// kernel: tpu_custom_call.1
= control target key start
LH: loop header
LB: loop body
LE: loop exit
PB: predicated region body
PF: predicated region fallthrough
CT: control target
= control target key end

     0   :  { %6 = vsyncpa [#allocation3], 0  ;;  %s397_s0 = inlined_call_operand.hbm [shape: f32[8,12544], index: 0, kind: input, shape index: {}, may-alias: {0,1}]   ;;  %s398_s1 = inlined_call_operand.hbm [shape: f32[8,12544], index: 1, kind: output, shape index: {}, may-alias: {0,1}]  }
   0x1   :  { %7 = vsyncpa [#allocation4], 0  ;;  %s376_s6 = smov [#allocation2]  }
   0x2   :  { %s14_s7 = sshll.u32 %s376_s6, 4  ;;  %s15_s7 = int_to_ptr.vmem [resolvable:$true] %s14_s7 }
   0x3   :  { %s340_s8 = scalar_lea.vmem %s15_s7, 12544  ;;  %p345_p1 = scmp.lt.s32.totalorder %s15_s7, %s15_s7 }
   0x4   :  { %p341_p0 = scmp.ne.s32.totalorder %s15_s7, %s340_s8  ;;  %p346_p2 = scmp.lt.s32.totalorder %s340_s8, %s340_s8 }
   0x6   :  { %p347_p3 = por %p346_p2, %p345_p1 }
   0x8   :  { %p348_p4 = pnand %p347_p3, %p341_p0 }
   0xa   :  { %351 = shalt.err (!%p348_p4)
}
   0xb   :  { %17 = dma.hbm_to_vmem [thread:$0]  %s397_s0, 12544, %s15_s7, [#allocation3]  }
   0xc   :  { %372 = dma.done.wait [#allocation3], 12544  }
   0xd   :  { %373 = vsyncadd [#allocation3], 4294954752  ;;  %v21_v0 = vld [vmem:[#allocation2] sm:$0xff]  ;;  %v22_v1 = vld [vmem:[#allocation2 + $0x8] sm:$0xff]  ;;  %s377_s11 = smov [#allocation5]  }
   0xe   :  { %v23_v2 = vld [vmem:[#allocation2 + $0x10] sm:$0xff]  ;;  %s391_s12 = sshll.u32 %s377_s11, 4  ;;  %v119_v3 = vmax.f32 %v21_v0, 0.0  ;;  %v120_v4 = vmax.f32 %v22_v1, 0.0  ;;  %v24_v6 = vld [vmem:[#allocation2 + $0x18] sm:$0xff]  ;;  %v25_v7 = vld [vmem:[#allocation2 + $0x20] sm:$0xff]  ;;  %s322_s12 = int_to_ptr.vmem [resolvable:$true] %s391_s12 }
   0xf   :  { %v121_v5 = vmax.f32 %v23_v2, 0.0  ;;  %v26_v8 = vld [vmem:[#allocation2 + $0x28] sm:$0xff]  ;;  %v122_v9 = vmax.f32 %v24_v6, 0.0  ;;  %v123_v10 = vmax.f32 %v25_v7, 0.0  ;;  %v27_v12 = vld [vmem:[#allocation2 + $0x30] sm:$0xff]  ;;  %v28_v13 = vld [vmem:[#allocation2 + $0x38] sm:$0xff]  ;;  %p357_p6 = scmp.lt.s32.totalorder %s322_s12, %s322_s12 }
  0x10   :  { %v124_v11 = vmax.f32 %v26_v8, 0.0  ;;  %v29_v14 = vld [vmem:[#allocation2 + $0x40] sm:$0xff]  ;;  %217 = vst [vmem:[#allocation5] sm:$0xff] %v119_v3  ;;  %218 = vst [vmem:[#allocation5 + $0x8] sm:$0xff] %v120_v4  ;;  %v125_v15 = vmax.f32 %v27_v12, 0.0  ;;  %v126_v16 = vmax.f32 %v28_v13, 0.0 }
  0x11   :  { %219 = vst [vmem:[#allocation5 + $0x10] sm:$0xff] %v121_v5  ;;  %v127_v17 = vmax.f32 %v29_v14, 0.0  ;;  %v30_v18 = vld [vmem:[#allocation2 + $0x48] sm:$0xff]  ;;  %v31_v19 = vld [vmem:[#allocation2 + $0x50] sm:$0xff]  ;;  %v32_v20 = vld [vmem:[#allocation2 + $0x58] sm:$0xff]  ;;  %s352_s0 = scalar_lea.vmem %s322_s12, 12544 }
  0x12   :  { %220 = vst [vmem:[#allocation5 + $0x18] sm:$0xff] %v122_v9  ;;  %221 = vst [vmem:[#allocation5 + $0x20] sm:$0xff] %v123_v10  ;;  %v128_v21 = vmax.f32 %v30_v18, 0.0  ;;  %v129_v22 = vmax.f32 %v31_v19, 0.0  ;;  %v130_v23 = vmax.f32 %v32_v20, 0.0  ;;  %v33_v24 = vld [vmem:[#allocation2 + $0x60] sm:$0xff]  ;;  %p353_p5 = scmp.ne.s32.totalorder %s322_s12, %s352_s0  ;;  %p358_p7 = scmp.lt.s32.totalorder %s352_s0, %s352_s0 }
  0x13   :  { %222 = vst [vmem:[#allocation5 + $0x28] sm:$0xff] %v124_v11  ;;  %v34_v25 = vld [vmem:[#allocation2 + $0x68] sm:$0xff]  ;;  %v35_v26 = vld [vmem:[#allocation2 + $0x70] sm:$0xff]  ;;  %223 = vst [vmem:[#allocation5 + $0x30] sm:$0xff] %v125_v15  ;;  %v131_v27 = vmax.f32 %v33_v24, 0.0 }
  0x14   :  { %224 = vst [vmem:[#allocation5 + $0x38] sm:$0xff] %v126_v16  ;;  %225 = vst [vmem:[#allocation5 + $0x40] sm:$0xff] %v127_v17  ;;  %v132_v28 = vmax.f32 %v34_v25, 0.0  ;;  %v133_v29 = vmax.f32 %v35_v26, 0.0  ;;  %v36_v30 = vld [vmem:[#allocation2 + $0x78] sm:$0xff]  ;;  %v37_v31 = vld [vmem:[#allocation2 + $0x80] sm:$0xff]  ;;  %p359_p8 = por %p358_p7, %p357_p6 }
  0x15   :  { %v38_v32 = vld [vmem:[#allocation2 + $0x88] sm:$0xff]  ;;  %226 = vst [vmem:[#allocation5 + $0x48] sm:$0xff] %v128_v21  ;;  %227 = vst [vmem:[#allocation5 + $0x50] sm:$0xff] %v129_v22  ;;  %v134_v33 = vmax.f32 %v36_v30, 0.0  ;;  %v135_v34 = vmax.f32 %v37_v31, 0.0  ;;  %v39_v36 = vld [vmem:[#allocation2 + $0x90] sm:$0xff] }
  0x16   :  { %228 = vst [vmem:[#allocation5 + $0x58] sm:$0xff] %v130_v23  ;;  %v136_v35 = vmax.f32 %v38_v32, 0.0  ;;  %v40_v37 = vld [vmem:[#allocation2 + $0x98] sm:$0xff]  ;;  %v41_v38 = vld [vmem:[#allocation2 + $0xa0] sm:$0xff]  ;;  %229 = vst [vmem:[#allocation5 + $0x60] sm:$0xff] %v131_v27  ;;  %v137_v39 = vmax.f32 %v39_v36, 0.0  ;;  %p360_p9 = pnand %p359_p8, %p353_p5 }
  0x17   :  { %230 = vst [vmem:[#allocation5 + $0x68] sm:$0xff] %v132_v28  ;;  %231 = vst [vmem:[#allocation5 + $0x70] sm:$0xff] %v133_v29  ;;  %v138_v40 = vmax.f32 %v40_v37, 0.0  ;;  %v139_v41 = vmax.f32 %v41_v38, 0.0  ;;  %v42_v42 = vld [vmem:[#allocation2 + $0xa8] sm:$0xff]  ;;  %v43_v43 = vld [vmem:[#allocation2 + $0xb0] sm:$0xff] }
  0x18   :  { %v44_v44 = vld [vmem:[#allocation2 + $0xb8] sm:$0xff]  ;;  %232 = vst [vmem:[#allocation5 + $0x78] sm:$0xff] %v134_v33  ;;  %233 = vst [vmem:[#allocation5 + $0x80] sm:$0xff] %v135_v34  ;;  %v140_v45 = vmax.f32 %v42_v42, 0.0  ;;  %v141_v46 = vmax.f32 %v43_v43, 0.0  ;;  %v45_v48 = vld [vmem:[#allocation2 + $0xc0] sm:$0xff] }
  0x19   :  { %234 = vst [vmem:[#allocation5 + $0x88] sm:$0xff] %v136_v35  ;;  %v142_v47 = vmax.f32 %v44_v44, 0.0  ;;  %v46_v49 = vld [vmem:[#allocation2 + $0xc8] sm:$0xff]  ;;  %v47_v50 = vld [vmem:[#allocation2 + $0xd0] sm:$0xff]  ;;  %235 = vst [vmem:[#allocation5 + $0x90] sm:$0xff] %v137_v39  ;;  %v143_v51 = vmax.f32 %v45_v48, 0.0 }
  0x1a   :  { %236 = vst [vmem:[#allocation5 + $0x98] sm:$0xff] %v138_v40  ;;  %237 = vst [vmem:[#allocation5 + $0xa0] sm:$0xff] %v139_v41  ;;  %v144_v52 = vmax.f32 %v46_v49, 0.0  ;;  %v145_v53 = vmax.f32 %v47_v50, 0.0  ;;  %v48_v54 = vld [vmem:[#allocation2 + $0xd8] sm:$0xff]  ;;  %v49_v55 = vld [vmem:[#allocation2 + $0xe0] sm:$0xff] }
  0x1b   :  { %v50_v56 = vld [vmem:[#allocation2 + $0xe8] sm:$0xff]  ;;  %238 = vst [vmem:[#allocation5 + $0xa8] sm:$0xff] %v140_v45  ;;  %239 = vst [vmem:[#allocation5 + $0xb0] sm:$0xff] %v141_v46  ;;  %v146_v57 = vmax.f32 %v48_v54, 0.0  ;;  %v147_v58 = vmax.f32 %v49_v55, 0.0  ;;  %v51_v60 = vld [vmem:[#allocation2 + $0xf0] sm:$0xff] }
  0x1c   :  { %240 = vst [vmem:[#allocation5 + $0xb8] sm:$0xff] %v142_v47  ;;  %v148_v59 = vmax.f32 %v50_v56, 0.0  ;;  %v52_v61 = vld [vmem:[#allocation2 + $0xf8] sm:$0xff]  ;;  %v53_v62 = vld [vmem:[#allocation2 + $0x100] sm:$0xff]  ;;  %241 = vst [vmem:[#allocation5 + $0xc0] sm:$0xff] %v143_v51  ;;  %v149_v63 = vmax.f32 %v51_v60, 0.0 }
  0x1d   :  { %242 = vst [vmem:[#allocation5 + $0xc8] sm:$0xff] %v144_v52  ;;  %243 = vst [vmem:[#allocation5 + $0xd0] sm:$0xff] %v145_v53  ;;  %v150_v0 = vmax.f32 %v52_v61, 0.0  ;;  %v151_v1 = vmax.f32 %v53_v62, 0.0  ;;  %v54_v2 = vld [vmem:[#allocation2 + $0x108] sm:$0xff]  ;;  %v55_v3 = vld [vmem:[#allocation2 + $0x110] sm:$0xff] }
  0x1e   :  { %v56_v4 = vld [vmem:[#allocation2 + $0x118] sm:$0xff]  ;;  %244 = vst [vmem:[#allocation5 + $0xd8] sm:$0xff] %v146_v57  ;;  %245 = vst [vmem:[#allocation5 + $0xe0] sm:$0xff] %v147_v58  ;;  %v152_v5 = vmax.f32 %v54_v2, 0.0  ;;  %v153_v6 = vmax.f32 %v55_v3, 0.0  ;;  %v57_v8 = vld [vmem:[#allocation2 + $0x120] sm:$0xff] }
  0x1f   :  { %246 = vst [vmem:[#allocation5 + $0xe8] sm:$0xff] %v148_v59  ;;  %v154_v7 = vmax.f32 %v56_v4, 0.0  ;;  %v58_v9 = vld [vmem:[#allocation2 + $0x128] sm:$0xff]  ;;  %v59_v10 = vld [vmem:[#allocation2 + $0x130] sm:$0xff]  ;;  %247 = vst [vmem:[#allocation5 + $0xf0] sm:$0xff] %v149_v63  ;;  %v155_v11 = vmax.f32 %v57_v8, 0.0 }
  0x20   :  { %248 = vst [vmem:[#allocation5 + $0xf8] sm:$0xff] %v150_v0  ;;  %249 = vst [vmem:[#allocation5 + $0x100] sm:$0xff] %v151_v1  ;;  %v156_v12 = vmax.f32 %v58_v9, 0.0  ;;  %v157_v13 = vmax.f32 %v59_v10, 0.0  ;;  %v60_v14 = vld [vmem:[#allocation2 + $0x138] sm:$0xff]  ;;  %v61_v15 = vld [vmem:[#allocation2 + $0x140] sm:$0xff] }
  0x21   :  { %v62_v16 = vld [vmem:[#allocation2 + $0x148] sm:$0xff]  ;;  %250 = vst [vmem:[#allocation5 + $0x108] sm:$0xff] %v152_v5  ;;  %251 = vst [vmem:[#allocation5 + $0x110] sm:$0xff] %v153_v6  ;;  %v158_v17 = vmax.f32 %v60_v14, 0.0  ;;  %v159_v18 = vmax.f32 %v61_v15, 0.0  ;;  %v63_v20 = vld [vmem:[#allocation2 + $0x150] sm:$0xff] }
  0x22   :  { %252 = vst [vmem:[#allocation5 + $0x118] sm:$0xff] %v154_v7  ;;  %v160_v19 = vmax.f32 %v62_v16, 0.0  ;;  %v64_v21 = vld [vmem:[#allocation2 + $0x158] sm:$0xff]  ;;  %v65_v22 = vld [vmem:[#allocation2 + $0x160] sm:$0xff]  ;;  %253 = vst [vmem:[#allocation5 + $0x120] sm:$0xff] %v155_v11  ;;  %v161_v23 = vmax.f32 %v63_v20, 0.0 }
  0x23   :  { %254 = vst [vmem:[#allocation5 + $0x128] sm:$0xff] %v156_v12  ;;  %255 = vst [vmem:[#allocation5 + $0x130] sm:$0xff] %v157_v13  ;;  %v162_v24 = vmax.f32 %v64_v21, 0.0  ;;  %v163_v25 = vmax.f32 %v65_v22, 0.0  ;;  %v66_v26 = vld [vmem:[#allocation2 + $0x168] sm:$0xff]  ;;  %v67_v27 = vld [vmem:[#allocation2 + $0x170] sm:$0xff] }
  0x24   :  { %v68_v28 = vld [vmem:[#allocation2 + $0x178] sm:$0xff]  ;;  %256 = vst [vmem:[#allocation5 + $0x138] sm:$0xff] %v158_v17  ;;  %257 = vst [vmem:[#allocation5 + $0x140] sm:$0xff] %v159_v18  ;;  %v164_v29 = vmax.f32 %v66_v26, 0.0  ;;  %v165_v30 = vmax.f32 %v67_v27, 0.0  ;;  %v69_v32 = vld [vmem:[#allocation2 + $0x180] sm:$0xff] }
  0x25   :  { %258 = vst [vmem:[#allocation5 + $0x148] sm:$0xff] %v160_v19  ;;  %v166_v31 = vmax.f32 %v68_v28, 0.0  ;;  %v70_v33 = vld [vmem:[#allocation2 + $0x188] sm:$0xff]  ;;  %v71_v34 = vld [vmem:[#allocation2 + $0x190] sm:$0xff]  ;;  %259 = vst [vmem:[#allocation5 + $0x150] sm:$0xff] %v161_v23  ;;  %v167_v35 = vmax.f32 %v69_v32, 0.0 }
  0x26   :  { %260 = vst [vmem:[#allocation5 + $0x158] sm:$0xff] %v162_v24  ;;  %261 = vst [vmem:[#allocation5 + $0x160] sm:$0xff] %v163_v25  ;;  %v168_v36 = vmax.f32 %v70_v33, 0.0  ;;  %v169_v37 = vmax.f32 %v71_v34, 0.0  ;;  %v72_v38 = vld [vmem:[#allocation2 + $0x198] sm:$0xff]  ;;  %v73_v39 = vld [vmem:[#allocation2 + $0x1a0] sm:$0xff] }
  0x27   :  { %v74_v40 = vld [vmem:[#allocation2 + $0x1a8] sm:$0xff]  ;;  %262 = vst [vmem:[#allocation5 + $0x168] sm:$0xff] %v164_v29  ;;  %263 = vst [vmem:[#allocation5 + $0x170] sm:$0xff] %v165_v30  ;;  %v170_v41 = vmax.f32 %v72_v38, 0.0  ;;  %v171_v42 = vmax.f32 %v73_v39, 0.0  ;;  %v75_v44 = vld [vmem:[#allocation2 + $0x1b0] sm:$0xff] }
  0x28   :  { %264 = vst [vmem:[#allocation5 + $0x178] sm:$0xff] %v166_v31  ;;  %v172_v43 = vmax.f32 %v74_v40, 0.0  ;;  %v76_v45 = vld [vmem:[#allocation2 + $0x1b8] sm:$0xff]  ;;  %v77_v46 = vld [vmem:[#allocation2 + $0x1c0] sm:$0xff]  ;;  %265 = vst [vmem:[#allocation5 + $0x180] sm:$0xff] %v167_v35  ;;  %v173_v47 = vmax.f32 %v75_v44, 0.0 }
  0x29   :  { %266 = vst [vmem:[#allocation5 + $0x188] sm:$0xff] %v168_v36  ;;  %267 = vst [vmem:[#allocation5 + $0x190] sm:$0xff] %v169_v37  ;;  %v174_v48 = vmax.f32 %v76_v45, 0.0  ;;  %v175_v49 = vmax.f32 %v77_v46, 0.0  ;;  %v78_v50 = vld [vmem:[#allocation2 + $0x1c8] sm:$0xff]  ;;  %v79_v51 = vld [vmem:[#allocation2 + $0x1d0] sm:$0xff] }
  0x2a   :  { %v80_v52 = vld [vmem:[#allocation2 + $0x1d8] sm:$0xff]  ;;  %268 = vst [vmem:[#allocation5 + $0x198] sm:$0xff] %v170_v41  ;;  %269 = vst [vmem:[#allocation5 + $0x1a0] sm:$0xff] %v171_v42  ;;  %v176_v53 = vmax.f32 %v78_v50, 0.0  ;;  %v177_v54 = vmax.f32 %v79_v51, 0.0  ;;  %v81_v56 = vld [vmem:[#allocation2 + $0x1e0] sm:$0xff] }
  0x2b   :  { %270 = vst [vmem:[#allocation5 + $0x1a8] sm:$0xff] %v172_v43  ;;  %v178_v55 = vmax.f32 %v80_v52, 0.0  ;;  %v82_v57 = vld [vmem:[#allocation2 + $0x1e8] sm:$0xff]  ;;  %v83_v58 = vld [vmem:[#allocation2 + $0x1f0] sm:$0xff]  ;;  %271 = vst [vmem:[#allocation5 + $0x1b0] sm:$0xff] %v173_v47  ;;  %v179_v59 = vmax.f32 %v81_v56, 0.0 }
  0x2c   :  { %272 = vst [vmem:[#allocation5 + $0x1b8] sm:$0xff] %v174_v48  ;;  %273 = vst [vmem:[#allocation5 + $0x1c0] sm:$0xff] %v175_v49  ;;  %v180_v60 = vmax.f32 %v82_v57, 0.0  ;;  %v181_v61 = vmax.f32 %v83_v58, 0.0  ;;  %v84_v62 = vld [vmem:[#allocation2 + $0x1f8] sm:$0xff]  ;;  %v85_v63 = vld [vmem:[#allocation2 + $0x200] sm:$0xff] }
  0x2d   :  { %v86_v0 = vld [vmem:[#allocation2 + $0x208] sm:$0xff]  ;;  %274 = vst [vmem:[#allocation5 + $0x1c8] sm:$0xff] %v176_v53  ;;  %275 = vst [vmem:[#allocation5 + $0x1d0] sm:$0xff] %v177_v54  ;;  %v182_v1 = vmax.f32 %v84_v62, 0.0  ;;  %v183_v2 = vmax.f32 %v85_v63, 0.0  ;;  %v87_v4 = vld [vmem:[#allocation2 + $0x210] sm:$0xff] }
  0x2e   :  { %276 = vst [vmem:[#allocation5 + $0x1d8] sm:$0xff] %v178_v55  ;;  %v184_v3 = vmax.f32 %v86_v0, 0.0  ;;  %v88_v5 = vld [vmem:[#allocation2 + $0x218] sm:$0xff]  ;;  %v89_v6 = vld [vmem:[#allocation2 + $0x220] sm:$0xff]  ;;  %277 = vst [vmem:[#allocation5 + $0x1e0] sm:$0xff] %v179_v59  ;;  %v185_v7 = vmax.f32 %v87_v4, 0.0 }
  0x2f   :  { %278 = vst [vmem:[#allocation5 + $0x1e8] sm:$0xff] %v180_v60  ;;  %279 = vst [vmem:[#allocation5 + $0x1f0] sm:$0xff] %v181_v61  ;;  %v186_v8 = vmax.f32 %v88_v5, 0.0  ;;  %v187_v9 = vmax.f32 %v89_v6, 0.0  ;;  %v90_v10 = vld [vmem:[#allocation2 + $0x228] sm:$0xff]  ;;  %v91_v11 = vld [vmem:[#allocation2 + $0x230] sm:$0xff] }
  0x30   :  { %v92_v12 = vld [vmem:[#allocation2 + $0x238] sm:$0xff]  ;;  %280 = vst [vmem:[#allocation5 + $0x1f8] sm:$0xff] %v182_v1  ;;  %281 = vst [vmem:[#allocation5 + $0x200] sm:$0xff] %v183_v2  ;;  %v188_v13 = vmax.f32 %v90_v10, 0.0  ;;  %v189_v14 = vmax.f32 %v91_v11, 0.0  ;;  %v93_v16 = vld [vmem:[#allocation2 + $0x240] sm:$0xff] }
  0x31   :  { %282 = vst [vmem:[#allocation5 + $0x208] sm:$0xff] %v184_v3  ;;  %v190_v15 = vmax.f32 %v92_v12, 0.0  ;;  %v94_v17 = vld [vmem:[#allocation2 + $0x248] sm:$0xff]  ;;  %v95_v18 = vld [vmem:[#allocation2 + $0x250] sm:$0xff]  ;;  %283 = vst [vmem:[#allocation5 + $0x210] sm:$0xff] %v185_v7  ;;  %v191_v19 = vmax.f32 %v93_v16, 0.0 }
  0x32   :  { %284 = vst [vmem:[#allocation5 + $0x218] sm:$0xff] %v186_v8  ;;  %285 = vst [vmem:[#allocation5 + $0x220] sm:$0xff] %v187_v9  ;;  %v192_v20 = vmax.f32 %v94_v17, 0.0  ;;  %v193_v21 = vmax.f32 %v95_v18, 0.0  ;;  %v96_v22 = vld [vmem:[#allocation2 + $0x258] sm:$0xff]  ;;  %v97_v23 = vld [vmem:[#allocation2 + $0x260] sm:$0xff] }
  0x33   :  { %v98_v24 = vld [vmem:[#allocation2 + $0x268] sm:$0xff]  ;;  %286 = vst [vmem:[#allocation5 + $0x228] sm:$0xff] %v188_v13  ;;  %287 = vst [vmem:[#allocation5 + $0x230] sm:$0xff] %v189_v14  ;;  %v194_v25 = vmax.f32 %v96_v22, 0.0  ;;  %v195_v26 = vmax.f32 %v97_v23, 0.0  ;;  %v99_v28 = vld [vmem:[#allocation2 + $0x270] sm:$0xff] }
  0x34   :  { %288 = vst [vmem:[#allocation5 + $0x238] sm:$0xff] %v190_v15  ;;  %v196_v27 = vmax.f32 %v98_v24, 0.0  ;;  %v100_v29 = vld [vmem:[#allocation2 + $0x278] sm:$0xff]  ;;  %v101_v30 = vld [vmem:[#allocation2 + $0x280] sm:$0xff]  ;;  %289 = vst [vmem:[#allocation5 + $0x240] sm:$0xff] %v191_v19  ;;  %v197_v31 = vmax.f32 %v99_v28, 0.0 }
  0x35   :  { %290 = vst [vmem:[#allocation5 + $0x248] sm:$0xff] %v192_v20  ;;  %291 = vst [vmem:[#allocation5 + $0x250] sm:$0xff] %v193_v21  ;;  %v198_v32 = vmax.f32 %v100_v29, 0.0  ;;  %v199_v33 = vmax.f32 %v101_v30, 0.0  ;;  %v102_v34 = vld [vmem:[#allocation2 + $0x288] sm:$0xff]  ;;  %v103_v35 = vld [vmem:[#allocation2 + $0x290] sm:$0xff] }
  0x36   :  { %v104_v36 = vld [vmem:[#allocation2 + $0x298] sm:$0xff]  ;;  %292 = vst [vmem:[#allocation5 + $0x258] sm:$0xff] %v194_v25  ;;  %293 = vst [vmem:[#allocation5 + $0x260] sm:$0xff] %v195_v26  ;;  %v200_v37 = vmax.f32 %v102_v34, 0.0  ;;  %v201_v38 = vmax.f32 %v103_v35, 0.0  ;;  %v105_v40 = vld [vmem:[#allocation2 + $0x2a0] sm:$0xff] }
  0x37   :  { %294 = vst [vmem:[#allocation5 + $0x268] sm:$0xff] %v196_v27  ;;  %v202_v39 = vmax.f32 %v104_v36, 0.0  ;;  %v106_v41 = vld [vmem:[#allocation2 + $0x2a8] sm:$0xff]  ;;  %v107_v42 = vld [vmem:[#allocation2 + $0x2b0] sm:$0xff]  ;;  %295 = vst [vmem:[#allocation5 + $0x270] sm:$0xff] %v197_v31  ;;  %v203_v43 = vmax.f32 %v105_v40, 0.0 }
  0x38   :  { %296 = vst [vmem:[#allocation5 + $0x278] sm:$0xff] %v198_v32  ;;  %297 = vst [vmem:[#allocation5 + $0x280] sm:$0xff] %v199_v33  ;;  %v204_v44 = vmax.f32 %v106_v41, 0.0  ;;  %v205_v45 = vmax.f32 %v107_v42, 0.0  ;;  %v108_v46 = vld [vmem:[#allocation2 + $0x2b8] sm:$0xff]  ;;  %v109_v47 = vld [vmem:[#allocation2 + $0x2c0] sm:$0xff] }
  0x39   :  { %v110_v48 = vld [vmem:[#allocation2 + $0x2c8] sm:$0xff]  ;;  %298 = vst [vmem:[#allocation5 + $0x288] sm:$0xff] %v200_v37  ;;  %299 = vst [vmem:[#allocation5 + $0x290] sm:$0xff] %v201_v38  ;;  %v206_v49 = vmax.f32 %v108_v46, 0.0  ;;  %v207_v50 = vmax.f32 %v109_v47, 0.0  ;;  %v111_v52 = vld [vmem:[#allocation2 + $0x2d0] sm:$0xff] }
  0x3a   :  { %300 = vst [vmem:[#allocation5 + $0x298] sm:$0xff] %v202_v39  ;;  %v208_v51 = vmax.f32 %v110_v48, 0.0  ;;  %v112_v53 = vld [vmem:[#allocation2 + $0x2d8] sm:$0xff]  ;;  %v113_v54 = vld [vmem:[#allocation2 + $0x2e0] sm:$0xff]  ;;  %301 = vst [vmem:[#allocation5 + $0x2a0] sm:$0xff] %v203_v43  ;;  %v209_v55 = vmax.f32 %v111_v52, 0.0 }
  0x3b   :  { %302 = vst [vmem:[#allocation5 + $0x2a8] sm:$0xff] %v204_v44  ;;  %303 = vst [vmem:[#allocation5 + $0x2b0] sm:$0xff] %v205_v45  ;;  %v210_v56 = vmax.f32 %v112_v53, 0.0  ;;  %v211_v57 = vmax.f32 %v113_v54, 0.0  ;;  %v114_v58 = vld [vmem:[#allocation2 + $0x2e8] sm:$0xff]  ;;  %v115_v59 = vld [vmem:[#allocation2 + $0x2f0] sm:$0xff] }
  0x3c   :  { %v116_v60 = vld [vmem:[#allocation2 + $0x2f8] sm:$0xff]  ;;  %304 = vst [vmem:[#allocation5 + $0x2b8] sm:$0xff] %v206_v49  ;;  %305 = vst [vmem:[#allocation5 + $0x2c0] sm:$0xff] %v207_v50  ;;  %v212_v61 = vmax.f32 %v114_v58, 0.0  ;;  %v213_v62 = vmax.f32 %v115_v59, 0.0  ;;  %v117_v0 = vld [vmem:[#allocation2 + $0x300] sm:$0xff] }
  0x3d   :  { %306 = vst [vmem:[#allocation5 + $0x2c8] sm:$0xff] %v208_v51  ;;  %v214_v63 = vmax.f32 %v116_v60, 0.0  ;;  %v118_v1 = vld [vmem:[#allocation2 + $0x308] sm:$0xff]  ;;  %307 = vst [vmem:[#allocation5 + $0x2d0] sm:$0xff] %v209_v55  ;;  %v215_v2 = vmax.f32 %v117_v0, 0.0 }
  0x3e   :  { %308 = vst [vmem:[#allocation5 + $0x2d8] sm:$0xff] %v210_v56  ;;  %309 = vst [vmem:[#allocation5 + $0x2e0] sm:$0xff] %v211_v57  ;;  %v216_v3 = vmax.f32 %v118_v1, 0.0 }
  0x3f   :  { %310 = vst [vmem:[#allocation5 + $0x2e8] sm:$0xff] %v212_v61  ;;  %311 = vst [vmem:[#allocation5 + $0x2f0] sm:$0xff] %v213_v62 }
  0x40   :  { %312 = vst [vmem:[#allocation5 + $0x2f8] sm:$0xff] %v214_v63  ;;  %313 = vst [vmem:[#allocation5 + $0x300] sm:$0xff] %v215_v2 }
  0x41   :  { %314 = vst [vmem:[#allocation5 + $0x308] sm:$0xff] %v216_v3 }
  0x42   :  { %363 = shalt.err (!%p360_p9)
}
  0x43   :  { %324 = dma.vmem_to_hbm [thread:$0]  %s322_s12, 12544, %s398_s1, [#allocation4]  }
  0x44   :  { %374 = dma.done.wait [#allocation4], 12544  }
  0x45   :  { %375 = vsyncadd [#allocation4], 4294954752 }
  0x46   :  { %328 = vsyncpa [#allocation3], 1 }
  0x47   :  { %329 = vsyncpa [#allocation4], 1 }

</bundles_post_ra>
